<compile_context>
chip_gen: v7x
topology: tpu7x:2x2x1
jax: 0.10.0
libtpu: 0.0.40
codegen_flags: <defaults>
</compile_context>

<pallas_src>
import functools

import jax
import jax.numpy as jnp
from jax.experimental import pallas as pl
from jax.experimental.pallas import tpu as pltpu

_MIB = 1024 * 1024


def _vmem_capacity_bytes() -> int:
    try:
        return int(pltpu.get_tpu_info().vmem_capacity_bytes)
    except Exception:
        return 64 * _MIB  # conservative: v7x per-TensorCore VMEM


def _largest_divisor_leq(n: int, cap: int) -> int:
    cap = max(1, min(n, cap))
    for d in range(cap, 0, -1):
        if n % d == 0:
            return d
    return 1


def _focal_kernel(x_ref, y_ref, alpha_ref, sum_ref, cnt_ref, sum_acc, cnt_acc,
                  *, gamma: float, ignore_index: int, hw: int, n_inner: int,
                  needs_tail_mask: bool):
    ii = pl.program_id(2)

    @pl.when(ii == 0)
    def _():
        sum_acc[...] = jnp.zeros_like(sum_acc)
        cnt_acc[...] = jnp.zeros_like(cnt_acc)

    x = x_ref[...].astype(jnp.float32)   # (br, C, T): classes on sublanes, pixels on lanes
    y = y_ref[...]                       # (br, 1, T) int32 labels
    alpha = alpha_ref[...]               # (1, C, 1) f32 per-class weights
    br, c, tsz = x.shape

    valid = y != ignore_index            # (br, 1, T) bool
    if needs_tail_mask:
        # Only emitted when HW has no multiple-of-128 divisor <= the tile cap.
        oi = pl.program_id(1)
        lane = jax.lax.broadcasted_iota(jnp.int32, (1, 1, tsz), 2)
        pos_ok = ((oi * n_inner + ii) * tsz + lane) < hw
        x = jnp.where(pos_ok, x, 0.0)    # scrub out-of-bounds garbage (NaN-safe)
        valid = jnp.logical_and(valid, pos_ok)

    # log-softmax over the class (sublane) axis.
    m = jnp.max(x, axis=1, keepdims=True)          # (br, 1, T)
    z = x - m                                      # (br, C, T)
    ez = jnp.exp(z)                                # (br, C, T)
    lse = jnp.log(jnp.sum(ez, axis=1, keepdims=True))   # (br, 1, T)

    # One-hot gathers along the class axis without materializing log_p.
    cls = jax.lax.broadcasted_iota(jnp.int32, (br, c, tsz), 1)
    onehot = (y == cls)                                                  # (br, C, T)
    z_y = jnp.sum(jnp.where(onehot, z, 0.0), axis=1, keepdims=True)      # (br, 1, T)
    a_y = jnp.sum(jnp.where(onehot, alpha, 0.0), axis=1, keepdims=True)  # (br, 1, T)

    log_pt = z_y - lse                   # <= 0
    ce = -a_y * log_pt

    # Focal term, specialized on gamma at trace time.
    if gamma == 0.0:
        loss = ce
    else:
        # Single (1,T) EUP exp instead of a (C,T) masked reduce + divide;
        # log_pt <= 0 keeps 1 - pt >= 0 (no negative-loss rounding).
        pt = jnp.exp(log_pt)
        one_minus_pt = 1.0 - pt
        gi = int(gamma)
        if float(gi) == gamma and 1 <= gi <= 4:
            focal = one_minus_pt
            for _ in range(gi - 1):
                focal = focal * one_minus_pt
        else:
            focal = jnp.power(jnp.maximum(one_minus_pt, 0.0), gamma)
        loss = focal * ce

    vf = valid.astype(jnp.float32)                 # (br, 1, T)
    sum_acc[...] += (loss * vf)[:, 0, :]           # lane-parallel accumulation
    cnt_acc[...] += vf[:, 0, :]

    @pl.when(ii == pl.num_programs(2) - 1)
    def _():
        sum_ref[...] = jnp.broadcast_to(jnp.sum(sum_acc[...]), sum_ref.shape)
        cnt_ref[...] = jnp.broadcast_to(jnp.sum(cnt_acc[...]), cnt_ref.shape)


def focal_loss(x, y, alpha=None, *, gamma: float = 0.0, reduction: str = "mean",
               ignore_index: int = -100, cast_logits_to_bf16: bool = False,
               vmem_limit_bytes: int | None = None):
    """x: (B, C, *spatial) float logits (channels-first). y: (B, *spatial) int labels.

    cast_logits_to_bf16: opt-in halving of HBM bytes for f32 inputs (useful on
    memory-bound v5e; v6e/v7x are VALU-bound either way). In-kernel math stays f32.
    """
    if reduction not in ("mean", "sum"):
        # TODO(synk): reduction='none' would need a per-row (unignored-only) output.
        raise ValueError("only 'mean' and 'sum' reductions are implemented")
    if x.ndim < 2:
        raise ValueError("x must be at least 2-D (batch, C, ...)")

    b, c = int(x.shape[0]), int(x.shape[1])
    hw = 1
    for d in x.shape[2:]:
        hw *= int(d)

    if cast_logits_to_bf16 and x.dtype == jnp.float32:
        x = x.astype(jnp.bfloat16)

    # Free reshapes only (contiguous trailing-dim merges): no transpose, no pad.
    x3 = x.reshape(b, c, hw)
    y3 = y.reshape(b, 1, hw).astype(jnp.int32)
    if alpha is None:
        alpha = jnp.ones((c,), jnp.float32)
    alpha3 = jnp.asarray(alpha, jnp.float32).reshape(1, c, 1)

    dsize = x3.dtype.itemsize

    # --- VMEM-derived tiling -------------------------------------------------
    capacity = _vmem_capacity_bytes()
    if vmem_limit_bytes is None:
        # v5e/v6e (128 MiB physical): 64 MiB; v7x (64 MiB physical): 32 MiB.
        vmem_limit_bytes = max(32 * _MIB, min(capacity // 2, 96 * _MIB))
    budget = (vmem_limit_bytes * 3) // 4  # headroom for pipelining / compiler temps

    # Conservative per-(row, pixel) VMEM estimate: double-buffered input tile,
    # ~6 live f32 (C, T) temporaries, int32 labels, f32 accumulators.
    per_col = 2 * c * dsize + 6 * c * 4 + 2 * 4 + 2 * 4
    max_tile = max(128, ((budget // per_col) // 128) * 128)

    br = 1
    if hw <= max_tile:
        # Whole spatial extent fits in one tile: fold batch rows to amortize the
        # ~0.35 us per-grid-step overhead (keep >= 2 grid points when B >= 2).
        t_eff = hw
        num_tiles = 1
        needs_tail_mask = False
        br_cap = max(1, budget // max(1, hw * per_col))
        if b >= 2:
            br_cap = min(br_cap, max(1, b // 2))
        br = _largest_divisor_leq(b, br_cap)
    else:
        # Prefer a multiple-of-128 divisor of hw so the tail mask is statically
        # dead; fall back to a masked ragged tail.
        t_eff = 0
        d = max_tile
        while d >= 128:
            if hw % d == 0:
                t_eff = d
                break
            d -= 128
        if t_eff:
            num_tiles = hw // t_eff
            needs_tail_mask = False
        else:
            t_eff = max_tile
            num_tiles = pl.cdiv(hw, t_eff)
            needs_tail_mask = True

    nb = b // br
    # Second parallel axis over spatial chunks so both v7x TensorCores stay busy
    # even when nb is 1 / odd (harmless on single-TC v5e/v6e).
    n_outer = 2 if (num_tiles >= 2 and num_tiles % 2 == 0) else 1
    n_inner = num_tiles // n_outer

    kernel = functools.partial(
        _focal_kernel, gamma=float(gamma), ignore_index=int(ignore_index),
        hw=hw, n_inner=n_inner, needs_tail_mask=needs_tail_mask)

    part_sum, part_cnt = pl.pallas_call(
        kernel,
        out_shape=(jax.ShapeDtypeStruct((nb * n_outer, 1, 1), jnp.float32),
                   jax.ShapeDtypeStruct((nb * n_outer, 1, 1), jnp.float32)),
        grid_spec=pltpu.PrefetchScalarGridSpec(
            num_scalar_prefetch=0,
            grid=(nb, n_outer, n_inner),
            in_specs=[
                pl.BlockSpec((br, c, t_eff),
                             lambda bi, oi, ii: (bi, 0, oi * n_inner + ii)),
                pl.BlockSpec((br, 1, t_eff),
                             lambda bi, oi, ii: (bi, 0, oi * n_inner + ii)),
                pl.BlockSpec((1, c, 1), lambda bi, oi, ii: (0, 0, 0)),
            ],
            out_specs=[
                pl.BlockSpec((1, 1, 1), lambda bi, oi, ii: (bi * n_outer + oi, 0, 0)),
                pl.BlockSpec((1, 1, 1), lambda bi, oi, ii: (bi * n_outer + oi, 0, 0)),
            ],
            scratch_shapes=[pltpu.VMEM((br, t_eff), jnp.float32),
                            pltpu.VMEM((br, t_eff), jnp.float32)],
        ),
        compiler_params=pltpu.CompilerParams(
            dimension_semantics=("parallel", "parallel", "arbitrary"),
            vmem_limit_bytes=int(vmem_limit_bytes)),
    )(x3, y3, alpha3)

    loss_sum = jnp.sum(part_sum)
    # Counts are f32: exact up to 2^24 valid pixels per partial (plenty for images).
    cnt = jnp.sum(part_cnt)
    if reduction == "sum":
        return loss_sum
    # 'mean': PyTorch returns 0.0 if every label is ignored.
    return jnp.where(cnt > 0, loss_sum / jnp.maximum(cnt, 1.0), 0.0)


def _focal_loss_ref(x, y, alpha, *, gamma, ignore_index):
    """Pure-JAX reference mirroring the PyTorch forward (reduction='mean')."""
    c = x.shape[1]
    x2 = jnp.moveaxis(x, 1, -1).reshape(-1, c).astype(jnp.float32)
    y2 = y.reshape(-1).astype(jnp.int32)
    valid = y2 != ignore_index
    log_p = jax.nn.log_softmax(x2, axis=-1)
    y_safe = jnp.where(valid, y2, 0)
    log_pt = jnp.take_along_axis(log_p, y_safe[:, None], axis=-1)[:, 0]
    ce = -alpha[y_safe] * log_pt
    pt = jnp.exp(log_pt)
    loss = ((1.0 - pt) ** gamma) * ce
    loss = jnp.where(valid, loss, 0.0)
    cnt = jnp.sum(valid.astype(jnp.float32))
    return jnp.where(cnt > 0, jnp.sum(loss) / jnp.maximum(cnt, 1.0), 0.0)


if __name__ == "__main__":
    B, C, H, W = 2, 4, 16, 16
    gamma = 2.0
    ignore_index = -100

    key = jax.random.PRNGKey(0)
    kx, ky, km = jax.random.split(key, 3)
    x = jax.random.normal(kx, (B, C, H, W), dtype=jnp.float32)
    y = jax.random.randint(ky, (B, H, W), 0, C, dtype=jnp.int32)
    # Sprinkle in some ignored labels to exercise masking.
    ignore_mask = jax.random.bernoulli(km, 0.1, (B, H, W))
    y = jnp.where(ignore_mask, jnp.int32(ignore_index), y)

    # Deterministic per-class alpha weights (shape (C,), as in the module ctor).
    alpha = jnp.linspace(0.25, 1.0, C, dtype=jnp.float32)

    out = focal_loss(x, y, alpha, gamma=gamma, reduction="mean",
                     ignore_index=ignore_index)
    out = jax.block_until_ready(out)

    ref = _focal_loss_ref(x, y, alpha, gamma=gamma, ignore_index=ignore_index)
    assert jnp.allclose(out, ref, atol=1e-4, rtol=1e-4), (out, ref)

    print("KERNEL_OK")
</pallas_src>

<mosaic_0001>
module attributes {stable_mosaic.version = 11 : i64} {
  func.func @_focal_kernel(%arg0: i32, %arg1: i32, %arg2: i32, %arg3: memref<1x4x256xf32, #tpu.memory_space<vmem>>, %arg4: memref<1x1x256xi32, #tpu.memory_space<vmem>>, %arg5: memref<1x4x1xf32, #tpu.memory_space<vmem>>, %arg6: memref<1x1x1xf32, #tpu.memory_space<vmem>>, %arg7: memref<1x1x1xf32, #tpu.memory_space<vmem>>, %arg8: memref<1x256xf32, #tpu.memory_space<vmem>>, %arg9: memref<1x256xf32, #tpu.memory_space<vmem>>) attributes {dimension_semantics = [#tpu.dimension_semantics<parallel>, #tpu.dimension_semantics<parallel>, #tpu.dimension_semantics<arbitrary>], iteration_bounds = array<i64: 2, 1, 1>, scalar_prefetch = 0 : i64, scratch_operands = 2 : i64, tpu.core_type = #tpu.core_type<tc>, window_params = [{transform_indices = @transform_0, window_bounds = array<i64: 1, 4, 256>}, {transform_indices = @transform_1, window_bounds = array<i64: 1, 1, 256>}, {pipeline_mode = #tpu.pipeline_mode<synchronous>, transform_indices = @transform_2, window_bounds = array<i64: 1, 4, 1>}, {transform_indices = @transform_3, window_bounds = array<i64: 1, 1, 1>}, {transform_indices = @transform_4, window_bounds = array<i64: 1, 1, 1>}]} {
    %c0_i32 = arith.constant 0 : i32
    %0 = arith.cmpi eq, %arg2, %c0_i32 : i32
    %1 = arith.extui %0 : i1 to i32
    %c0_i32_0 = arith.constant 0 : i32
    %2 = arith.cmpi ne, %1, %c0_i32_0 : i32
    scf.if %2 {
      %cst_26 = arith.constant 0.000000e+00 : f32
      %52 = vector.broadcast %cst_26 : f32 to vector<1x256xf32>
      %c0_27 = arith.constant 0 : index
      %c0_28 = arith.constant 0 : index
      %53 = vector.load %arg8[%c0_27, %c0_28] : memref<1x256xf32, #tpu.memory_space<vmem>>, vector<1x256xf32>
      tpu.vector_store %arg8[%c0_27, %c0_28], %52 {strides = array<i32>} : memref<1x256xf32, #tpu.memory_space<vmem>>, vector<1x256xf32>,
      %cst_29 = arith.constant 0.000000e+00 : f32
      %54 = vector.broadcast %cst_29 : f32 to vector<1x256xf32>
      %c0_30 = arith.constant 0 : index
      %c0_31 = arith.constant 0 : index
      %55 = vector.load %arg9[%c0_30, %c0_31] : memref<1x256xf32, #tpu.memory_space<vmem>>, vector<1x256xf32>
      tpu.vector_store %arg9[%c0_30, %c0_31], %54 {strides = array<i32>} : memref<1x256xf32, #tpu.memory_space<vmem>>, vector<1x256xf32>,
    } else {
    }
    %c0 = arith.constant 0 : index
    %c0_1 = arith.constant 0 : index
    %c0_2 = arith.constant 0 : index
    %3 = vector.load %arg3[%c0, %c0_1, %c0_2] : memref<1x4x256xf32, #tpu.memory_space<vmem>>, vector<1x4x256xf32>
    %c0_3 = arith.constant 0 : index
    %c0_4 = arith.constant 0 : index
    %c0_5 = arith.constant 0 : index
    %4 = vector.load %arg4[%c0_3, %c0_4, %c0_5] : memref<1x1x256xi32, #tpu.memory_space<vmem>>, vector<1x1x256xi32>
    %c0_6 = arith.constant 0 : index
    %c0_7 = arith.constant 0 : index
    %c0_8 = arith.constant 0 : index
    %5 = vector.load %arg5[%c0_6, %c0_7, %c0_8] : memref<1x4x1xf32, #tpu.memory_space<vmem>>, vector<1x4x1xf32>
    %c-100_i32 = arith.constant -100 : i32
    %6 = vector.broadcast %c-100_i32 : i32 to vector<1x1x256xi32>
    %7 = arith.cmpi ne, %4, %6 : vector<1x1x256xi32>
    %cst = arith.constant dense<0xFF800000> : vector<1x256xf32>
    %8 = vector.multi_reduction <maximumf>, %3, %cst [1] : vector<1x4x256xf32> to vector<1x256xf32>
    %9 = vector.shape_cast %8 : vector<1x256xf32> to vector<1x1x256xf32>
    %10 = vector.broadcast %9 : vector<1x1x256xf32> to vector<1x4x256xf32>
    %11 = arith.subf %3, %10 : vector<1x4x256xf32>
    %12 = math.exp %11 : vector<1x4x256xf32>
    %cst_9 = arith.constant dense<0.000000e+00> : vector<1x256xf32>
    %13 = vector.multi_reduction <add>, %12, %cst_9 [1] : vector<1x4x256xf32> to vector<1x256xf32>
    %14 = vector.shape_cast %13 : vector<1x256xf32> to vector<1x1x256xf32>
    %15 = math.log %14 : vector<1x1x256xf32>
    %16 = tpu.iota {dimensions = array<i32: 1>} : vector<1x4x256xi32>
    %17 = vector.broadcast %4 : vector<1x1x256xi32> to vector<1x4x256xi32>
    %18 = arith.cmpi eq, %17, %16 : vector<1x4x256xi32>
    %cst_10 = arith.constant 0.000000e+00 : f32
    %19 = vector.broadcast %cst_10 : f32 to vector<1x4x256xf32>
    %20 = arith.select %18, %11, %19 : vector<1x4x256xi1>, vector<1x4x256xf32>
    %cst_11 = arith.constant dense<0.000000e+00> : vector<1x256xf32>
    %21 = vector.multi_reduction <add>, %20, %cst_11 [1] : vector<1x4x256xf32> to vector<1x256xf32>
    %22 = vector.shape_cast %21 : vector<1x256xf32> to vector<1x1x256xf32>
    %cst_12 = arith.constant 0.000000e+00 : f32
    %23 = vector.shape_cast %5 : vector<1x4x1xf32> to vector<1x4x1xf32>
    %24 = vector.broadcast %23 : vector<1x4x1xf32> to vector<1x4x256xf32>
    %25 = vector.broadcast %cst_12 : f32 to vector<1x4x256xf32>
    %26 = arith.select %18, %24, %25 : vector<1x4x256xi1>, vector<1x4x256xf32>
    %cst_13 = arith.constant dense<0.000000e+00> : vector<1x256xf32>
    %27 = vector.multi_reduction <add>, %26, %cst_13 [1] : vector<1x4x256xf32> to vector<1x256xf32>
    %28 = vector.shape_cast %27 : vector<1x256xf32> to vector<1x1x256xf32>
    %29 = arith.subf %22, %15 : vector<1x1x256xf32>
    %cst_14 = arith.constant 0.000000e+00 : f32
    %30 = vector.broadcast %cst_14 : f32 to vector<1x1x256xf32>
    %31 = arith.subf %30, %28 : vector<1x1x256xf32>
    %32 = arith.mulf %31, %29 : vector<1x1x256xf32>
    %33 = math.exp %29 : vector<1x1x256xf32>
    %cst_15 = arith.constant 1.000000e+00 : f32
    %34 = vector.broadcast %cst_15 : f32 to vector<1x1x256xf32>
    %35 = arith.subf %34, %33 : vector<1x1x256xf32>
    %36 = arith.mulf %35, %35 : vector<1x1x256xf32>
    %37 = arith.mulf %36, %32 : vector<1x1x256xf32>
    %38 = arith.extui %7 : vector<1x1x256xi1> to vector<1x1x256xi32>
    %39 = arith.sitofp %38 : vector<1x1x256xi32> to vector<1x1x256xf32>
    %c0_16 = arith.constant 0 : index
    %c0_17 = arith.constant 0 : index
    %40 = vector.load %arg8[%c0_16, %c0_17] : memref<1x256xf32, #tpu.memory_space<vmem>>, vector<1x256xf32>
    %41 = arith.mulf %37, %39 : vector<1x1x256xf32>
    %42 = vector.shape_cast %41 : vector<1x1x256xf32> to vector<1x256xf32>
    %43 = arith.addf %40, %42 : vector<1x256xf32>
    %c0_18 = arith.constant 0 : index
    %c0_19 = arith.constant 0 : index
    %44 = vector.load %arg8[%c0_18, %c0_19] : memref<1x256xf32, #tpu.memory_space<vmem>>, vector<1x256xf32>
    tpu.vector_store %arg8[%c0_18, %c0_19], %43 {strides = array<i32>} : memref<1x256xf32, #tpu.memory_space<vmem>>, vector<1x256xf32>,
    %c0_20 = arith.constant 0 : index
    %c0_21 = arith.constant 0 : index
    %45 = vector.load %arg9[%c0_20, %c0_21] : memref<1x256xf32, #tpu.memory_space<vmem>>, vector<1x256xf32>
    %46 = vector.shape_cast %39 : vector<1x1x256xf32> to vector<1x256xf32>
    %47 = arith.addf %45, %46 : vector<1x256xf32>
    %c0_22 = arith.constant 0 : index
    %c0_23 = arith.constant 0 : index
    %48 = vector.load %arg9[%c0_22, %c0_23] : memref<1x256xf32, #tpu.memory_space<vmem>>, vector<1x256xf32>
    tpu.vector_store %arg9[%c0_22, %c0_23], %47 {strides = array<i32>} : memref<1x256xf32, #tpu.memory_space<vmem>>, vector<1x256xf32>,
    %c0_i32_24 = arith.constant 0 : i32
    %49 = arith.cmpi eq, %arg2, %c0_i32_24 : i32
    %50 = arith.extui %49 : i1 to i32
    %c0_i32_25 = arith.constant 0 : i32
    %51 = arith.cmpi ne, %50, %c0_i32_25 : i32
    scf.if %51 {
      %c0_26 = arith.constant 0 : index
      %c0_27 = arith.constant 0 : index
      %52 = vector.load %arg8[%c0_26, %c0_27] : memref<1x256xf32, #tpu.memory_space<vmem>>, vector<1x256xf32>
      %53 = vector.shape_cast %52 : vector<1x256xf32> to vector<1x1x256xf32>
      %cst_28 = arith.constant dense<0.000000e+00> : vector<1xf32>
      %54 = vector.multi_reduction <add>, %53, %cst_28 [1, 2] : vector<1x1x256xf32> to vector<1xf32>
      %55 = vector.shape_cast %54 : vector<1xf32> to vector<1x1x1xf32>
      %56 = vector.extract %55[0, 0, 0] : f32 from vector<1x1x1xf32>
      %57 = vector.broadcast %56 : f32 to vector<1x1x1xf32>
      %c0_29 = arith.constant 0 : index
      %c0_30 = arith.constant 0 : index
      %c0_31 = arith.constant 0 : index
      %58 = vector.load %arg6[%c0_29, %c0_30, %c0_31] : memref<1x1x1xf32, #tpu.memory_space<vmem>>, vector<1x1x1xf32>
      tpu.vector_store %arg6[%c0_29, %c0_30, %c0_31], %57 {strides = array<i32>} : memref<1x1x1xf32, #tpu.memory_space<vmem>>, vector<1x1x1xf32>,
      %c0_32 = arith.constant 0 : index
      %c0_33 = arith.constant 0 : index
      %59 = vector.load %arg9[%c0_32, %c0_33] : memref<1x256xf32, #tpu.memory_space<vmem>>, vector<1x256xf32>
      %60 = vector.shape_cast %59 : vector<1x256xf32> to vector<1x1x256xf32>
      %cst_34 = arith.constant dense<0.000000e+00> : vector<1xf32>
      %61 = vector.multi_reduction <add>, %60, %cst_34 [1, 2] : vector<1x1x256xf32> to vector<1xf32>
      %62 = vector.shape_cast %61 : vector<1xf32> to vector<1x1x1xf32>
      %63 = vector.extract %62[0, 0, 0] : f32 from vector<1x1x1xf32>
      %64 = vector.broadcast %63 : f32 to vector<1x1x1xf32>
      %c0_35 = arith.constant 0 : index
      %c0_36 = arith.constant 0 : index
      %c0_37 = arith.constant 0 : index
      %65 = vector.load %arg7[%c0_35, %c0_36, %c0_37] : memref<1x1x1xf32, #tpu.memory_space<vmem>>, vector<1x1x1xf32>
      tpu.vector_store %arg7[%c0_35, %c0_36, %c0_37], %64 {strides = array<i32>} : memref<1x1x1xf32, #tpu.memory_space<vmem>>, vector<1x1x1xf32>,
    } else {
    }
    return
  }
  func.func @transform_0(%arg0: i32, %arg1: i32, %arg2: i32) -> (i32, i32, i32) {
    %c1_i32 = arith.constant 1 : i32
    %0 = arith.muli %arg1, %c1_i32 : i32
    %1 = arith.addi %0, %arg2 : i32
    %c0_i32 = arith.constant 0 : i32
    %c0_i32_0 = arith.constant 0 : i32
    return %arg0, %c0_i32, %1 : i32, i32, i32
  }
  func.func @transform_1(%arg0: i32, %arg1: i32, %arg2: i32) -> (i32, i32, i32) {
    %c1_i32 = arith.constant 1 : i32
    %0 = arith.muli %arg1, %c1_i32 : i32
    %1 = arith.addi %0, %arg2 : i32
    %c0_i32 = arith.constant 0 : i32
    %c0_i32_0 = arith.constant 0 : i32
    return %arg0, %c0_i32, %1 : i32, i32, i32
  }
  func.func @transform_2(%arg0: i32, %arg1: i32, %arg2: i32) -> (i32, i32, i32) {
    %c0_i32 = arith.constant 0 : i32
    %c0_i32_0 = arith.constant 0 : i32
    %c0_i32_1 = arith.constant 0 : i32
    %c0_i32_2 = arith.constant 0 : i32
    return %c0_i32, %c0_i32_0, %c0_i32_1 : i32, i32, i32
  }
  func.func @transform_3(%arg0: i32, %arg1: i32, %arg2: i32) -> (i32, i32, i32) {
    %c1_i32 = arith.constant 1 : i32
    %0 = arith.muli %arg0, %c1_i32 : i32
    %1 = arith.addi %0, %arg1 : i32
    %c0_i32 = arith.constant 0 : i32
    %c0_i32_0 = arith.constant 0 : i32
    %c0_i32_1 = arith.constant 0 : i32
    return %1, %c0_i32, %c0_i32_0 : i32, i32, i32
  }
  func.func @transform_4(%arg0: i32, %arg1: i32, %arg2: i32) -> (i32, i32, i32) {
    %c1_i32 = arith.constant 1 : i32
    %0 = arith.muli %arg0, %c1_i32 : i32
    %1 = arith.addi %0, %arg1 : i32
    %c0_i32 = arith.constant 0 : i32
    %c0_i32_0 = arith.constant 0 : i32
    %c0_i32_1 = arith.constant 0 : i32
    return %1, %c0_i32, %c0_i32_0 : i32, i32, i32
  }
}

</mosaic_0001>

<bundles_post_ra>
// kernel: tpu_custom_call.1
= control target key start
LH: loop header
LB: loop body
LE: loop exit
PB: predicated region body
PF: predicated region fallthrough
CT: control target
= control target key end

     0   :  { %10 = vsyncpa [#allocation5], 0  ;;  %s1049_s0 = inlined_call_operand.hbm [shape: f32[2,4,256], index: 0, kind: input, shape index: {}]   ;;  %s1050_s1 = inlined_call_operand.vmem [shape: s32[2,1,256], index: 1, kind: input, shape index: {}]   ;;  %s1051_s2 = inlined_call_operand.vmem [shape: f32[1,4,1], index: 2, kind: input, shape index: {}]   ;;  %s1052_s3 = inlined_call_operand.vmem [shape: f32[2,1,1], index: 3, kind: output, shape index: {0}]   ;;  %s1053_s4 = inlined_call_operand.vmem [shape: f32[2,1,1], index: 4, kind: output, shape index: {1}]  }
   0x1   :  { %12 = vsyncpa [#allocation5 + $0x1], 0  ;;  %s846_s15 = smov 0   ;;  %s848_s16 = smov 0  }
   0x2   :  { %s850_s17 = smov 0   ;;  %s852_s18 = smov 0  }
   0x3   :  { %s854_s19 = smov 0   ;;  %s856_s20 = smov 0  }
   0x4 LB: > { %s647_s21 = sadd.s32 4294967295, %s815_s20   ;;  %s37_s22 = sadd.s32 1, %s811_s19  ;;  %s815_s20 = sphi %s856_s20, %s18_s20   ;;  %s811_s19 = sphi %s854_s19, %s1069_s19   ;;  %s807_s18 = sphi %s852_s18, %s1068_s18   ;;  %s803_s17 = sphi %s850_s17, %s1067_s17   ;;  %s799_s16 = sphi %s848_s16, %s1066_s16   ;;  %s795_s15 = sphi %s846_s15, %s1065_s15  }
   0x5   : > { %p39_p0 = scmp.ge.s32.totalorder %s37_s22, 2  ;;  %s48_s23 = sadd.s32 1, %s803_s17 }
   0x6   : > { %p55_p1 = scmp.ne.s32.totalorder %s803_s17, %s799_s16  ;;  %p56_p2 = scmp.eq.s32.totalorder %s815_s20, 0 }
   0x7   : > { %s1071_s22 = smov (%p39_p0, %s37_s22), 0  ;;  %p61_p4 = scmp.ne.s32.totalorder %s799_s16, %s795_s15 }
   0x8   : > { %p882_p3 = por %p56_p2, %p55_p1  ;;  %s43_s25 = ssub.s32 %s811_s19, %s1071_s22 }
   0x9   : > { %p62_p5 = scmp.eq.s32.totalorder %s647_s21, 0  ;;  %p46_p6 = scmp.eq.s32.totalorder %s43_s25, 0 }
   0xa   : > { %p671_p8 = scmp.lt.s32.totalorder %s815_s20, 2  ;;  %s195_s28 = sand.u32 1, %s803_s17  }
   0xb   : > { %p889_p7 = por %p62_p5, %p61_p4  ;;  %s660_s29 = sshll.u32 %s811_s19, 7 }
   0xc   : > { %s895_s27 = scalar_select %p46_p6, %s803_s17, %s48_s23  }
   0xd   : > { %s651_s30 = sshll.u32 %s195_s28, 3  ;;  %s902_s7 = scalar_lea.hbm %s1049_s0, %s660_s29 }
   0xe   : > { %s199_s8 = scalar_lea.vmem [#allocation4], %s651_s30  ;;  %p906_p9 = pnand %p671_p8, %p882_p3 }
   0xf   : > { %s210_s9 = sshll.u32 %s199_s8, 4  ;;  %s196_s11 = scalar_lea.sflag [#allocation5], %s195_s28  ;;  %s910_s9 = int_to_ptr.vmem [resolvable:$true] %s210_s9 }
  0x10   : > { %s735_s12 = scalar_lea.hbm %s902_s7, 128  ;;  %p737_p13 = pneg %p906_p9 }
  0x11   : > { %p736_p12 = scmp.ne.s32.totalorder %s902_s7, %s735_s12  ;;  %s740_s15 = scalar_lea.hbm %s1049_s0, 256 }
  0x12   : > { %p741_p2 = scmp.lt.u32.totalorder %s902_s7, %s1049_s0  ;;  %p742_p3 = scmp.lt.u32.totalorder %s740_s15, %s735_s12 }
  0x13   : > { %p738_p0 = pnand %p737_p13, %p736_p12  ;;  %p744_p5 = scmp.lt.u32.totalorder %s735_s12, %s902_s7 }
  0x14   : > { %p743_p4 = por %p742_p3, %p741_p2 }
  0x15   : > { %p739_p1 = pneg %p738_p0 }
  0x16   : > { %p745_p6 = por %p744_p5, %p743_p4 }
  0x18   : > { %p746_p8 = pnand %p745_p6, %p739_p1 }
  0x1a   : > { %749 = shalt.err (!%p746_p8)
}
  0x1b   : > { %s750_s24 = scalar_lea.vmem %s910_s9, 128  ;;  %s817_s25 = smov [#allocation4]  }
  0x1c   : > { %p751_p12 = scmp.ne.s32.totalorder %s910_s9, %s750_s24  ;;  %s755_s28 = sshll.u32 %s817_s25, 4  ;;  %s756_s28 = int_to_ptr.vmem [resolvable:$false] %s755_s28 }
  0x1d   : > { %s757_s29 = scalar_lea.vmem %s756_s28, 256  ;;  %p758_p11 = scmp.lt.s32.totalorder %s910_s9, %s756_s28 }
  0x1e   : > { %p753_p0 = pnand %p751_p12, %p737_p13  ;;  %p759_p2 = scmp.lt.s32.totalorder %s757_s29, %s750_s24 }
  0x20   : > { %p754_p10 = pneg %p753_p0  ;;  %p760_p3 = por %p759_p2, %p758_p11 }
  0x22   : > { %p761_p4 = pnand %p760_p3, %p754_p10 }
  0x24   : > { %764 = shalt.err (!%p761_p4)
}
  0x25   : > { %670 = dma.hbm_to_vmem [thread:$0]  (!%p906_p9), %s902_s7, 128, %s910_s9, %s196_s11  }
  0x26   : > { %p1057_p1 = scmp.lt.s32.totalorder %s815_s20, 3  ;;  %p1058_p5 = scmp.ge.s32.totalorder %s815_s20, 1 }
  0x28   : > { %p230_p13 = pnand %p1058_p5, %p1057_p1 }
  0x29   : > { %s235_s30 = sand.u32 (!%p230_p13), 1, %s799_s16  }
  0x2a   : > { %233 = sbr.rel (%p230_p13) target bundleno = 430 (0x1ae), region = 32  ;;  %s655_s5 = sshll.u32 (!%p230_p13), %s235_s30, 3 }
  0x2b   : > { %s236_s6 = scalar_lea.sflag (!%p230_p13), [#allocation5], %s235_s30  ;;  %s239_s8 = scalar_lea.vmem (!%p230_p13), [#allocation4], %s655_s5 }
  0x31   : > { %790 = dma.done.wait (%p889_p7), %s236_s6, 128  }
  0x32   : > { %792 = vsyncadd (%p889_p7), %s236_s6, 4294967168  ;;  %p280_p10 = scmp.lt.s32.totalorder %s807_s18, 1  ;;  %v303_v0 = vlaneseq  ;;  %v818_v1 = vmov 0   ;;  %v819_v4 = vmov 0.0   ;;  %v311_v7 = vld [vmem:[%s1051_s2] sm:$0xf] }
  0x33   : > { %723 = vset.pattern.permute.xlu0 %v818_v1  ;;  %v309_v13 = vld [vmem:[%s239_s8] sm:$0xff]  ;;  %vm316_vm3 = vcmask 1043456   ;;  %vm485_vm5 = vcmask 1040384   ;;  %v820_v12 = vmov 1966171168   ;;  %vm499_vm6 = vcmask 0  }
  0x34   : > { %s1073_s18 = smov (!%p280_p10, %s807_s18), 1  ;;  %vm952_vm0 = vcmp.lt.s32.totalorder %v303_v0, 256  ;;  %v956_v3 = vshrl.u32 %v303_v0, 7  ;;  %392 = vperm.xlu0 %723, %v311_v7   ;;  %v314_v14 = vcombine.high %v309_v13, %v309_v13  ;;  %v317_v15 = vsel %vm316_vm3, %v309_v13, -inf }
  0x35   : > { %307 = vst.msk [vmem:[#allocation2] sm:$0x3] %vm952_vm0, %v819_v4  ;;  %308 = vst.msk [vmem:[#allocation3] sm:$0x3] %vm952_vm0, %v819_v4  ;;  %s656_s26 = sshll.u32 %s1073_s18, 1  ;;  %v318_v17 = vrot.slane %v317_v15, 4  ;;  %s292_s15 = scalar_lea.vmem %s1052_s3, %s1073_s18 }
  0x36   : > { %v964_v5 = vsub.s32 0, %v956_v3  ;;  %s286_s10 = scalar_lea.vmem %s1050_s1, %s656_s26  ;;  %v970_v6 = vsub.s32 1, %v956_v3  ;;  %v324_v16 = vsel %vm316_vm3, %v314_v14, -inf  ;;  %s297_s25 = scalar_lea.vmem %s1053_s4, %s1073_s18 }
  0x37   : > { %v310_v8 = vld [vmem:[%s286_s10] sm:$0x3]  ;;  %v325_v18 = vrot.slane %v324_v16, 4  ;;  %v319_v22 = vmax.f32 %v317_v15, %v318_v17 }
  0x38   : > { %v364_v9 = vrot.slane %v310_v8, %v964_v5  ;;  %v368_v10 = vrot.slane %v310_v8, %v970_v6  ;;  %vm312_vm4 = vcmp.ne.s32.totalorder %v310_v8, 4294967196 }
  0x39   : > { %v989_v19 = vsel %vm312_vm4, 1.0, %v819_v4  ;;  %v326_v23 = vmax.f32 %v324_v16, %v325_v18  ;;  %v320_v24 = vrot.slane %v319_v22, 2 }
  0x3a   : > { %vm978_vm1 = vcmp.eq.s32.totalorder %v364_v9, %v956_v3  ;;  %vm983_vm2 = vcmp.eq.s32.totalorder %v368_v10, %v956_v3 }
  0x3b   : > { %v327_v25 = vrot.slane %v326_v23, 2  ;;  %v321_v27 = vmax.f32 %v319_v22, %v320_v24 }
  0x3c   : > { %v467_v20 = vld [vmem:[#allocation3] sm:$0x3] }
  0x3d   : > { %v468_v21 = vadd.f32 %v989_v19, %v467_v20  ;;  %v328_v28 = vmax.f32 %v326_v23, %v327_v25  ;;  %v322_v34 = vrot.slane %v321_v27, 1 }
  0x3f   : > { %469 = vst.msk [vmem:[#allocation3] sm:$0x3] %vm952_vm0, %v468_v21  ;;  %v329_v35 = vrot.slane %v328_v28, 1  ;;  %v323_v36 = vmax.f32 %v321_v27, %v322_v34 }
  0x41   : > { %v330_v37 = vmax.f32 %v328_v28, %v329_v35 }
  0x43   : > { %v333_v38 = vcombine.low %v323_v36, %v330_v37 }
  0x45   : > { %v335_v39 = vsub.f32 %v309_v13, %v333_v38 }
  0x46   : > { %v501_v26 = vld [vmem:[#allocation3] sm:$0x3] }
  0x47   : > { %v506_v29 = vrot.slane %v501_v26, %v964_v5  ;;  %v510_v30 = vrot.slane %v501_v26, %v970_v6  ;;  %v336_v40 = vmul.f32 1.442695, %v335_v39  ;;  %v372_v50 = vcombine.high %v335_v39, %v335_v39 }
  0x48   : > { %v374_v52 = vsel %vm978_vm1, %v335_v39, 0.0 }
  0x49   : > { %v513_v31 = vsel %vm485_vm5, %v506_v29, 0.0  ;;  %v514_v32 = vsel %vm485_vm5, %v510_v30, 0.0  ;;  %725 = vpow2.f32 %v336_v40  ;;  %v375_v54 = vsel %vm983_vm2, %v372_v50, 0.0 }
  0x4a   : > { %v515_v33 = vadd.f32 %v514_v32, %v513_v31  ;;  %v376_v56 = vsel %vm316_vm3, %v374_v52, 0.0  ;;  %v383_v57 = vsel %vm316_vm3, %v375_v54, 0.0  ;;  %v438_v54 = vrot.slane %v989_v19, %v970_v6 }
  0x4b   : > { %v377_v60 = vrot.slane %v376_v56, 4  ;;  %v384_v61 = vrot.slane %v383_v57, 4 }
  0x4c   : > { %516 = vadd.xlane.f32.xlu1 %v515_v33 }
  0x4d   : > { %v378_v0 = vadd.f32 %v377_v60, %v376_v56  ;;  %v385_v1 = vadd.f32 %v384_v61, %v383_v57 }
  0x4f   : > { %v379_v4 = vrot.slane %v378_v0, 2  ;;  %v386_v7 = vrot.slane %v385_v1, 2 }
  0x51   : > { %v380_v8 = vadd.f32 %v379_v4, %v378_v0  ;;  %v387_v9 = vadd.f32 %v386_v7, %v385_v1 }
  0x53   : > { %v726_v41 = vpop.eup %725  ;;  %v381_v10 = vrot.slane %v380_v8, 1  ;;  %v388_v14 = vrot.slane %v387_v9, 1 }
  0x54   : > { %v339_v42 = vcombine.high %v726_v41, %v726_v41  ;;  %v341_v43 = vsel %vm316_vm3, %v726_v41, 0.0 }
  0x55   : > { %v342_v45 = vrot.slane %v341_v43, 4  ;;  %v382_v17 = vadd.f32 %v381_v10, %v380_v8  ;;  %v389_v20 = vadd.f32 %v388_v14, %v387_v9 }
  0x56   : > { %v348_v44 = vsel %vm316_vm3, %v339_v42, 0.0 }
  0x57   : > { %v349_v46 = vrot.slane %v348_v44, 4  ;;  %v343_v47 = vadd.f32 %v342_v45, %v341_v43  ;;  %v447_v43 = vunpack.c.l.s4 %v820_v12 }
  0x59   : > { %v350_v48 = vadd.f32 %v349_v46, %v348_v44  ;;  %v344_v49 = vrot.slane %v343_v47, 2  ;;  %v448_v50 = vunpack.c.0.s8 %v447_v43 }
  0x5b   : > { %v351_v51 = vrot.slane %v350_v48, 2  ;;  %v345_v53 = vadd.f32 %v344_v49, %v343_v47  ;;  %v451_v57 = vsub.s32 %v448_v50, %v956_v3 }
  0x5d   : > { %v352_v55 = vadd.f32 %v351_v51, %v350_v48  ;;  %v346_v58 = vrot.slane %v345_v53, 1 }
  0x5f   : > { %v353_v59 = vrot.slane %v352_v55, 1  ;;  %v347_v62 = vadd.f32 %v346_v58, %v345_v53  ;;  %v434_v53 = vrot.slane %v989_v19, %v964_v5 }
  0x61   : > { %v354_v63 = vadd.f32 %v353_v59, %v352_v55  ;;  %727 = vlog2.f32 %v347_v62  ;;  %v429_v62 = vld [vmem:[#allocation2] sm:$0x3] }
  0x63   : > { %729 = vlog2.f32 %v354_v63 }
  0x6b   : > { %v728_v13 = vpop.eup %727 }
  0x6c   : > { %v356_v16 = vmul.f32 0.6931472, %v728_v13 }
  0x6d   : > { %v730_v15 = vpop.eup %729 }
  0x6e   : > { %v358_v18 = vmul.f32 0.6931472, %v730_v15  ;;  %v411_v21 = vsub.f32 %v382_v17, %v356_v16 }
  0x70   : > { %v412_v22 = vsub.f32 %v389_v20, %v358_v18  ;;  %v417_v23 = vmul.f32 1.442695, %v411_v21 }
  0x72   : > { %v419_v24 = vmul.f32 1.442695, %v412_v22  ;;  %731 = vpow2.f32 %v417_v23 }
  0x74   : > { %733 = vpow2.f32 %v419_v24 }
  0x7c   : > { %v732_v34 = vpop.eup %731 }
  0x7d   : > { %v421_v41 = vsub.f32 1.0, %v732_v34 }
  0x7e   : > { %v734_v37 = vpop.eup %733 }
  0x7f   : > { %v422_v42 = vsub.f32 1.0, %v734_v37  ;;  %v423_v48 = vmul.f32 %v421_v41, %v421_v41 }
  0x81   : > { %v424_v49 = vmul.f32 %v422_v42, %v422_v42 }
  0xb3   : > { %v393_v25 = vpop.permute.xlu0 %392 }
  0xb4   : > { %v395_v26 = vsel %vm978_vm1, %v393_v25, 0.0  ;;  %v396_v27 = vsel %vm983_vm2, %v393_v25, 0.0 }
  0xb5   : > { %v397_v28 = vsel %vm316_vm3, %v395_v26, 0.0  ;;  %v404_v29 = vsel %vm316_vm3, %v396_v27, 0.0 }
  0xb6   : > { %v398_v30 = vrot.slane %v397_v28, 4  ;;  %v405_v31 = vrot.slane %v404_v29, 4 }
  0xb8   : > { %v399_v32 = vadd.f32 %v398_v30, %v397_v28  ;;  %v406_v33 = vadd.f32 %v405_v31, %v404_v29 }
  0xba   : > { %v400_v35 = vrot.slane %v399_v32, 2  ;;  %v407_v36 = vrot.slane %v406_v33, 2 }
  0xbc   : > { %v401_v38 = vadd.f32 %v400_v35, %v399_v32  ;;  %v408_v39 = vadd.f32 %v407_v36, %v406_v33 }
  0xbe   : > { %v402_v40 = vrot.slane %v401_v38, 1  ;;  %v409_v11 = vrot.slane %v408_v39, 1 }
  0xc0   : > { %v403_v44 = vadd.f32 %v402_v40, %v401_v38  ;;  %v410_v45 = vadd.f32 %v409_v11, %v408_v39 }
  0xc2   : > { %v413_v46 = vsub.f32 0.0, %v403_v44  ;;  %v414_v47 = vsub.f32 0.0, %v410_v45 }
  0xc4   : > { %v415_v51 = vmul.f32 %v413_v46, %v411_v21  ;;  %v416_v52 = vmul.f32 %v414_v47, %v412_v22 }
  0xc6   : > { %v425_v55 = vmul.f32 %v423_v48, %v415_v51  ;;  %v426_v56 = vmul.f32 %v424_v49, %v416_v52 }
  0xc8   : > { %v441_v58 = vmul.f32 %v434_v53, %v425_v55  ;;  %v442_v59 = vmul.f32 %v438_v54, %v426_v56 }
  0xca   : > { %v445_v60 = vcombine.low %v441_v58, %v442_v59 }
  0xcc   : > { %v452_v61 = vrot.slane %v445_v60, %v451_v57 }
  0xce   : > { %v459_v63 = vrot.slane %v452_v61, %v451_v57 }
  0xd0   : > { %v461_v0 = vadd.f32 %v459_v63, %v429_v62 }
  0xd2   : > { %466 = vst.msk [vmem:[#allocation2] sm:$0x3] %vm952_vm0, %v461_v0 }
  0xd9   : > { %v473_v1 = vld [vmem:[#allocation2] sm:$0x3]  ;;  %v517_v9 = vpop.xlane.xlu1 %516 }
  0xda   : > { %v478_v4 = vrot.slane %v473_v1, %v964_v5  ;;  %v482_v7 = vrot.slane %v473_v1, %v970_v6  ;;  %v518_v10 = vrot.slane %v517_v9, 4 }
  0xdc   : > { %v486_v19 = vsel %vm485_vm5, %v478_v4, 0.0  ;;  %v487_v8 = vsel %vm485_vm5, %v482_v7, 0.0  ;;  %v519_v13 = vadd.f32 %v518_v10, %v517_v9 }
  0xdd   : > { %v488_v3 = vadd.f32 %v487_v8, %v486_v19 }
  0xde   : > { %v520_v14 = vrot.slane %v519_v13, 2 }
  0xdf   : > { %489 = vadd.xlane.f32.xlu0 %v488_v3 }
  0xe0   : > { %v521_v17 = vadd.f32 %v520_v14, %v519_v13 }
  0xe2   : > { %v522_v20 = vrot.slane %v521_v17, 1 }
  0xe4   : > { %v523_v22 = vadd.f32 %v522_v20, %v521_v17 }
 0x16c   : > { %v490_v15 = vpop.xlane.xlu0 %489 }
 0x16d   : > { %v491_v2 = vrot.slane %v490_v15, 4 }
 0x16f   : > { %v492_v16 = vadd.f32 %v491_v2, %v490_v15 }
 0x171   : > { %v493_v18 = vrot.slane %v492_v16, 2 }
 0x173   : > { %v494_v5 = vadd.f32 %v493_v18, %v492_v16 }
 0x175   : > { %v495_v6 = vrot.slane %v494_v5, 1 }
 0x177   : > { %v496_v21 = vadd.f32 %v495_v6, %v494_v5 }
 0x179   : > { %661 = vpush %v496_v21 }
 0x17a   : > { %663 = vpush %v523_v22 }
 0x1aa   : > { %s662_s21 = spop %661 }
 0x1ab   : > { %v498_v23 = vstv %s662_s21  ;;  %s664_s28 = spop %663 }
 0x1ac   : > { %500 = vst.msk [vmem:[%s292_s15] sm:$0x1] %vm499_vm6, %v498_v23  ;;  %v525_v24 = vstv %s664_s28 }
 0x1ad   : > { %526 = vst.msk [vmem:[%s297_s25] sm:$0x1] %vm499_vm6, %v525_v24 }
 0x1ae PF: > { %s18_s20 = sadd.s32 1, %s815_s20   ;;  %s1065_s15 = smov %s799_s16 }
 0x1af   : > { %p15_p7 = scmp.ge.s32.totalorder %s18_s20, 4   ;;  %s1066_s16 = smov %s803_s17 }
 0x1b0   : > { %s1067_s17 = smov %s895_s27  ;;  %s1068_s18 = smov %s811_s19 }
 0x1b1   : > { %s1069_s19 = smov %s1071_s22  ;;  %17 = sbr.rel (!%p15_p7) target bundleno = 4 (0x4), region = 95 }
 0x1b8   :  { %562 = vsyncpa [#allocation5], 1 }
 0x1b9   :  { %564 = vsyncpa [#allocation5 + $0x1], 1 }

</bundles_post_ra>
